<compile_context>
chip_gen: v5e
topology: v5e:2x2
jax: 0.10.0
libtpu: 0.0.40
codegen_flags: <defaults>
</compile_context>

<pallas_src>
import functools
import math

import jax
import jax.numpy as jnp
from jax.experimental import pallas as pl
from jax.experimental.pallas import tpu as pltpu

EPS = 1e-6


# ------------------------------ kernel helpers ------------------------------ #

def _layer_norm(x, g, b):
    """a_2 * (x - mean) / (std + eps) + b_2 with torch's unbiased (N-1) std."""
    mean = jnp.mean(x, axis=-1, keepdims=True)
    xc = x - mean
    var = jnp.sum(xc * xc, axis=-1, keepdims=True) / (x.shape[-1] - 1)
    std = jnp.sqrt(var)
    # keep (std + eps) semantics; reciprocal goes to the EUP slot
    return g * xc * pl.reciprocal(std + EPS, approx=True) + b


# --------------------------- fused per-layer kernel -------------------------- #

def _encoder_layer_kernel(x_ref, m_ref,
                          ln1g_ref, ln1b_ref, wqkv_ref, bqkv_ref, wo_ref, bo_ref,
                          ln2g_ref, ln2b_ref, w1_ref, b1_ref, w2_ref, b2_ref,
                          o_ref, *, H, scale):
    x = x_ref[0]          # [S, D]
    m = m_ref[0]          # [S, S], 1.0 = keep, 0.0 = masked
    S, D = x.shape
    dk = D // H

    # ---- sublayer 0: pre-norm multi-head self-attention + residual ----------
    y = _layer_norm(x, ln1g_ref[...], ln1b_ref[...])
    qkv = jnp.dot(y, wqkv_ref[...], preferred_element_type=jnp.float32) + bqkv_ref[...]
    q, k, v = qkv[:, :D], qkv[:, D:2 * D], qkv[:, 2 * D:]

    heads = []
    for h in range(H):                      # static unroll; heads = contiguous lanes
        sl = slice(h * dk, (h + 1) * dk)
        s = jnp.dot(q[:, sl], k[:, sl].T, preferred_element_type=jnp.float32) * scale
        s = jnp.where(m < 0.5, -1e9, s)     # masked_fill(mask == 0, -1e9)
        s = s - jnp.max(s, axis=-1, keepdims=True)
        p = jnp.exp(s)
        p = p * pl.reciprocal(jnp.sum(p, axis=-1, keepdims=True), approx=True)
        heads.append(jnp.dot(p, v[:, sl], preferred_element_type=jnp.float32))
    attn = jnp.concatenate(heads, axis=-1)  # [S, D] lane-dense head merge

    x = x + jnp.dot(attn, wo_ref[...], preferred_element_type=jnp.float32) + bo_ref[...]

    # ---- sublayer 1: pre-norm position-wise feed-forward + residual ---------
    y2 = _layer_norm(x, ln2g_ref[...], ln2b_ref[...])
    hff = jnp.dot(y2, w1_ref[...], preferred_element_type=jnp.float32) + b1_ref[...]
    hff = jnp.maximum(hff, 0.0)
    x = x + jnp.dot(hff, w2_ref[...], preferred_element_type=jnp.float32) + b2_ref[...]

    o_ref[0] = x.astype(o_ref.dtype)


def _final_ln_kernel(x_ref, g_ref, b_ref, o_ref):
    o_ref[0] = _layer_norm(x_ref[0], g_ref[...], b_ref[...]).astype(o_ref.dtype)


# ------------------------------ thin wrappers ------------------------------- #

def _full_spec(arr):
    # whole-array block (equal to full dims -> satisfies the (8,128) rule)
    return pl.BlockSpec(arr.shape, lambda b, _nd=arr.ndim: (0,) * _nd)


def encoder_layer(x, mask_bss, lp, *, H):
    B, S, D = x.shape
    dff = lp["w1"].shape[1]
    dk = D // H
    scale = 1.0 / math.sqrt(dk)

    # advisory cost estimate for the XLA scheduler
    flops = B * (8 * S * D * D + 4 * S * S * D + 4 * S * D * dff)
    transcendentals = B * (H * S * S + H * S + 2 * S)
    bytes_accessed = 4 * (2 * B * S * D + B * S * S
                          + 4 * D * D + 2 * D * dff + 3 * D + 6 * D + dff)

    return pl.pallas_call(
        functools.partial(_encoder_layer_kernel, H=H, scale=scale),
        out_shape=jax.ShapeDtypeStruct((B, S, D), x.dtype),
        grid=(B,),
        in_specs=[
            pl.BlockSpec((1, S, D), lambda b: (b, 0, 0)),   # x (per-batch row)
            pl.BlockSpec((1, S, S), lambda b: (b, 0, 0)),   # mask, shared by all heads
            _full_spec(lp["ln1_g"]), _full_spec(lp["ln1_b"]),
            _full_spec(lp["wqkv"]), _full_spec(lp["bqkv"]),
            _full_spec(lp["wo"]), _full_spec(lp["bo"]),
            _full_spec(lp["ln2_g"]), _full_spec(lp["ln2_b"]),
            _full_spec(lp["w1"]), _full_spec(lp["b1"]),
            _full_spec(lp["w2"]), _full_spec(lp["b2"]),
        ],
        out_specs=pl.BlockSpec((1, S, D), lambda b: (b, 0, 0)),
        compiler_params=pltpu.CompilerParams(dimension_semantics=("parallel",)),
        cost_estimate=pl.CostEstimate(flops=flops,
                                      transcendentals=transcendentals,
                                      bytes_accessed=bytes_accessed),
    )(x, mask_bss,
      lp["ln1_g"], lp["ln1_b"], lp["wqkv"], lp["bqkv"], lp["wo"], lp["bo"],
      lp["ln2_g"], lp["ln2_b"], lp["w1"], lp["b1"], lp["w2"], lp["b2"])


def final_layernorm(x, g, b):
    B, S, D = x.shape
    return pl.pallas_call(
        _final_ln_kernel,
        out_shape=jax.ShapeDtypeStruct((B, S, D), x.dtype),
        grid=(B,),
        in_specs=[pl.BlockSpec((1, S, D), lambda i: (i, 0, 0)),
                  pl.BlockSpec((1, D), lambda i: (0, 0)),
                  pl.BlockSpec((1, D), lambda i: (0, 0))],
        out_specs=pl.BlockSpec((1, S, D), lambda i: (i, 0, 0)),
        compiler_params=pltpu.CompilerParams(dimension_semantics=("parallel",)),
    )(x, g, b)


# ----------------------------- encoder forward ------------------------------ #

def encoder_forward(x, mask, params):
    B, S, D = x.shape
    H = params["H"]
    # keep a single [B, S, S] mask; every head of a batch row reuses it (no B*H copy)
    mask_bss = mask.astype(jnp.float32).reshape(B, S, S)

    for lp in params["layers"]:
        x = encoder_layer(x, mask_bss, lp, H=H)

    return final_layernorm(x, params["lnf_g"], params["lnf_b"])


# ------------------------------- param init --------------------------------- #

def init_params(key, D, H, dff, N):
    def dense(k, din, dout):
        bound = 1.0 / math.sqrt(din)
        kw, kb = jax.random.split(k)
        w = jax.random.uniform(kw, (din, dout), jnp.float32, -bound, bound)
        b = jax.random.uniform(kb, (1, dout), jnp.float32, -bound, bound)
        return w, b

    layers = []
    keys = jax.random.split(key, N + 1)
    for li in range(N):
        ks = jax.random.split(keys[li], 6)
        wq, bq = dense(ks[0], D, D)
        wk, bk = dense(ks[1], D, D)
        wv, bv = dense(ks[2], D, D)
        wo, bo = dense(ks[3], D, D)
        w1, b1 = dense(ks[4], D, dff)
        w2, b2 = dense(ks[5], dff, D)
        layers.append(dict(
            ln1_g=jnp.ones((1, D), jnp.float32), ln1_b=jnp.zeros((1, D), jnp.float32),
            # fused QKV projection: one [D, 3D] weight, one MXU matmul
            wqkv=jnp.concatenate([wq, wk, wv], axis=1),
            bqkv=jnp.concatenate([bq, bk, bv], axis=1),
            wo=wo, bo=bo,
            ln2_g=jnp.ones((1, D), jnp.float32), ln2_b=jnp.zeros((1, D), jnp.float32),
            w1=w1, b1=b1, w2=w2, b2=b2,
        ))
    return dict(
        H=H,
        layers=layers,
        lnf_g=jnp.ones((1, D), jnp.float32),
        lnf_b=jnp.zeros((1, D), jnp.float32),
    )


# ---------------------------------- main ------------------------------------ #

if __name__ == "__main__":
    B, S, D, H, DFF, N = 2, 8, 32, 4, 64, 2

    key = jax.random.PRNGKey(0)
    kx, kp = jax.random.split(key)
    x = jax.random.normal(kx, (B, S, D), dtype=jnp.float32)

    # padding-style source mask: batch 0 keeps all S tokens, batch 1 keeps 6
    lengths = jnp.array([S, 6], dtype=jnp.int32)
    key_mask = (jnp.arange(S)[None, :] < lengths[:, None]).astype(jnp.float32)  # [B, S]
    mask = key_mask[:, None, None, :] * jnp.ones((1, 1, S, 1), jnp.float32)      # [B, 1, S, S]

    params = init_params(kp, D, H, DFF, N)

    out = encoder_forward(x, mask, params)
    out = jax.block_until_ready(out)
    assert out.shape == (B, S, D) and jnp.all(jnp.isfinite(out))
    print("KERNEL_OK")
</pallas_src>

<mosaic_0001>
module attributes {stable_mosaic.version = 11 : i64} {
  func.func @_encoder_layer_kernel(%arg0: i32, %arg1: memref<1x8x32xf32, #tpu.memory_space<vmem>>, %arg2: memref<1x8x8xf32, #tpu.memory_space<vmem>>, %arg3: memref<1x32xf32, #tpu.memory_space<vmem>>, %arg4: memref<1x32xf32, #tpu.memory_space<vmem>>, %arg5: memref<32x96xf32, #tpu.memory_space<vmem>>, %arg6: memref<1x96xf32, #tpu.memory_space<vmem>>, %arg7: memref<32x32xf32, #tpu.memory_space<vmem>>, %arg8: memref<1x32xf32, #tpu.memory_space<vmem>>, %arg9: memref<1x32xf32, #tpu.memory_space<vmem>>, %arg10: memref<1x32xf32, #tpu.memory_space<vmem>>, %arg11: memref<32x64xf32, #tpu.memory_space<vmem>>, %arg12: memref<1x64xf32, #tpu.memory_space<vmem>>, %arg13: memref<64x32xf32, #tpu.memory_space<vmem>>, %arg14: memref<1x32xf32, #tpu.memory_space<vmem>>, %arg15: memref<1x8x32xf32, #tpu.memory_space<vmem>>) attributes {dimension_semantics = [#tpu.dimension_semantics<parallel>], iteration_bounds = array<i64: 2>, scalar_prefetch = 0 : i64, scratch_operands = 0 : i64, tpu.core_type = #tpu.core_type<tc>, window_params = [{transform_indices = @transform_0, window_bounds = array<i64: 1, 8, 32>}, {transform_indices = @transform_1, window_bounds = array<i64: 1, 8, 8>}, {pipeline_mode = #tpu.pipeline_mode<synchronous>, transform_indices = @transform_2, window_bounds = array<i64: 1, 32>}, {pipeline_mode = #tpu.pipeline_mode<synchronous>, transform_indices = @transform_3, window_bounds = array<i64: 1, 32>}, {pipeline_mode = #tpu.pipeline_mode<synchronous>, transform_indices = @transform_4, window_bounds = array<i64: 32, 96>}, {pipeline_mode = #tpu.pipeline_mode<synchronous>, transform_indices = @transform_5, window_bounds = array<i64: 1, 96>}, {pipeline_mode = #tpu.pipeline_mode<synchronous>, transform_indices = @transform_6, window_bounds = array<i64: 32, 32>}, {pipeline_mode = #tpu.pipeline_mode<synchronous>, transform_indices = @transform_7, window_bounds = array<i64: 1, 32>}, {pipeline_mode = #tpu.pipeline_mode<synchronous>, transform_indices = @transform_8, window_bounds = array<i64: 1, 32>}, {pipeline_mode = #tpu.pipeline_mode<synchronous>, transform_indices = @transform_9, window_bounds = array<i64: 1, 32>}, {pipeline_mode = #tpu.pipeline_mode<synchronous>, transform_indices = @transform_10, window_bounds = array<i64: 32, 64>}, {pipeline_mode = #tpu.pipeline_mode<synchronous>, transform_indices = @transform_11, window_bounds = array<i64: 1, 64>}, {pipeline_mode = #tpu.pipeline_mode<synchronous>, transform_indices = @transform_12, window_bounds = array<i64: 64, 32>}, {pipeline_mode = #tpu.pipeline_mode<synchronous>, transform_indices = @transform_13, window_bounds = array<i64: 1, 32>}, {transform_indices = @transform_14, window_bounds = array<i64: 1, 8, 32>}]} {
    %c0 = arith.constant 0 : index
    %c0_0 = arith.constant 0 : index
    %c0_1 = arith.constant 0 : index
    %0 = vector.load %arg1[%c0, %c0_0, %c0_1] : memref<1x8x32xf32, #tpu.memory_space<vmem>>, vector<1x8x32xf32>
    %1 = vector.shape_cast %0 : vector<1x8x32xf32> to vector<8x32xf32>
    %c0_2 = arith.constant 0 : index
    %c0_3 = arith.constant 0 : index
    %c0_4 = arith.constant 0 : index
    %2 = vector.load %arg2[%c0_2, %c0_3, %c0_4] : memref<1x8x8xf32, #tpu.memory_space<vmem>>, vector<1x8x8xf32>
    %3 = vector.shape_cast %2 : vector<1x8x8xf32> to vector<8x8xf32>
    %c0_5 = arith.constant 0 : index
    %c0_6 = arith.constant 0 : index
    %4 = vector.load %arg3[%c0_5, %c0_6] : memref<1x32xf32, #tpu.memory_space<vmem>>, vector<1x32xf32>
    %c0_7 = arith.constant 0 : index
    %c0_8 = arith.constant 0 : index
    %5 = vector.load %arg4[%c0_7, %c0_8] : memref<1x32xf32, #tpu.memory_space<vmem>>, vector<1x32xf32>
    %cst = arith.constant dense<0.000000e+00> : vector<8xf32>
    %6 = vector.multi_reduction <add>, %1, %cst [1] : vector<8x32xf32> to vector<8xf32>
    %7 = vector.shape_cast %6 : vector<8xf32> to vector<8x1xf32>
    %cst_9 = arith.constant 3.200000e+01 : f32
    %8 = vector.broadcast %cst_9 : f32 to vector<8x1xf32>
    %9 = arith.divf %7, %8 : vector<8x1xf32>
    %10 = vector.broadcast %9 : vector<8x1xf32> to vector<8x32xf32>
    %11 = arith.subf %1, %10 : vector<8x32xf32>
    %12 = arith.mulf %11, %11 : vector<8x32xf32>
    %cst_10 = arith.constant dense<0.000000e+00> : vector<8xf32>
    %13 = vector.multi_reduction <add>, %12, %cst_10 [1] : vector<8x32xf32> to vector<8xf32>
    %14 = vector.shape_cast %13 : vector<8xf32> to vector<8x1xf32>
    %cst_11 = arith.constant 3.100000e+01 : f32
    %15 = vector.broadcast %cst_11 : f32 to vector<8x1xf32>
    %16 = arith.divf %14, %15 : vector<8x1xf32>
    %17 = math.sqrt %16 : vector<8x1xf32>
    %18 = vector.broadcast %4 : vector<1x32xf32> to vector<8x32xf32>
    %19 = arith.mulf %18, %11 : vector<8x32xf32>
    %cst_12 = arith.constant 9.99999997E-7 : f32
    %20 = vector.broadcast %cst_12 : f32 to vector<8x1xf32>
    %21 = arith.addf %17, %20 : vector<8x1xf32>
    %22 = tpu.reciprocal %21 {approx = true} : vector<8x1xf32> -> vector<8x1xf32>
    %23 = vector.broadcast %22 : vector<8x1xf32> to vector<8x32xf32>
    %24 = arith.mulf %19, %23 : vector<8x32xf32>
    %25 = vector.broadcast %5 : vector<1x32xf32> to vector<8x32xf32>
    %26 = arith.addf %24, %25 : vector<8x32xf32>
    %c0_13 = arith.constant 0 : index
    %c0_14 = arith.constant 0 : index
    %27 = vector.load %arg5[%c0_13, %c0_14] : memref<32x96xf32, #tpu.memory_space<vmem>>, vector<32x96xf32>
    %cst_15 = arith.constant dense<0.000000e+00> : vector<8x96xf32>
    %28 = tpu.matmul %26, %27, %cst_15 {dimension_numbers = #tpu.dot_dimension_numbers<[1], [0], [0], [1], [0, 0, 1, 1], [], []>} : vector<8x32xf32>, vector<32x96xf32>, vector<8x96xf32> -> vector<8x96xf32>
    %c0_16 = arith.constant 0 : index
    %c0_17 = arith.constant 0 : index
    %29 = vector.load %arg6[%c0_16, %c0_17] : memref<1x96xf32, #tpu.memory_space<vmem>>, vector<1x96xf32>
    %30 = vector.broadcast %29 : vector<1x96xf32> to vector<8x96xf32>
    %31 = arith.addf %28, %30 : vector<8x96xf32>
    %32 = vector.extract_strided_slice %31 {offsets = [0, 0], sizes = [8, 32], strides = [1, 1]} : vector<8x96xf32> to vector<8x32xf32>
    %33 = vector.extract_strided_slice %31 {offsets = [0, 32], sizes = [8, 32], strides = [1, 1]} : vector<8x96xf32> to vector<8x32xf32>
    %34 = vector.extract_strided_slice %31 {offsets = [0, 64], sizes = [8, 32], strides = [1, 1]} : vector<8x96xf32> to vector<8x32xf32>
    %35 = vector.extract_strided_slice %32 {offsets = [0, 0], sizes = [8, 8], strides = [1, 1]} : vector<8x32xf32> to vector<8x8xf32>
    %36 = vector.extract_strided_slice %33 {offsets = [0, 0], sizes = [8, 8], strides = [1, 1]} : vector<8x32xf32> to vector<8x8xf32>
    %37 = tpu.transpose %36, [1, 0] : vector<8x8xf32> -> vector<8x8xf32>
    %cst_18 = arith.constant dense<0.000000e+00> : vector<8x8xf32>
    %38 = tpu.matmul %35, %37, %cst_18 {dimension_numbers = #tpu.dot_dimension_numbers<[1], [0], [0], [1], [0, 0, 1, 1], [], []>} : vector<8x8xf32>, vector<8x8xf32>, vector<8x8xf32> -> vector<8x8xf32>
    %cst_19 = arith.constant 0.353553385 : f32
    %39 = vector.broadcast %cst_19 : f32 to vector<8x8xf32>
    %40 = arith.mulf %38, %39 : vector<8x8xf32>
    %cst_20 = arith.constant 5.000000e-01 : f32
    %41 = vector.broadcast %cst_20 : f32 to vector<8x8xf32>
    %42 = arith.cmpf olt, %3, %41 : vector<8x8xf32>
    %cst_21 = arith.constant -1.000000e+09 : f32
    %43 = vector.broadcast %cst_21 : f32 to vector<8x8xf32>
    %44 = arith.select %42, %43, %40 : vector<8x8xi1>, vector<8x8xf32>
    %cst_22 = arith.constant dense<0xFF800000> : vector<8xf32>
    %45 = vector.multi_reduction <maximumf>, %44, %cst_22 [1] : vector<8x8xf32> to vector<8xf32>
    %46 = vector.shape_cast %45 : vector<8xf32> to vector<8x1xf32>
    %47 = vector.broadcast %46 : vector<8x1xf32> to vector<8x8xf32>
    %48 = arith.subf %44, %47 : vector<8x8xf32>
    %49 = math.exp %48 : vector<8x8xf32>
    %cst_23 = arith.constant dense<0.000000e+00> : vector<8xf32>
    %50 = vector.multi_reduction <add>, %49, %cst_23 [1] : vector<8x8xf32> to vector<8xf32>
    %51 = vector.shape_cast %50 : vector<8xf32> to vector<8x1xf32>
    %52 = tpu.reciprocal %51 {approx = true} : vector<8x1xf32> -> vector<8x1xf32>
    %53 = vector.broadcast %52 : vector<8x1xf32> to vector<8x8xf32>
    %54 = arith.mulf %49, %53 : vector<8x8xf32>
    %55 = vector.extract_strided_slice %34 {offsets = [0, 0], sizes = [8, 8], strides = [1, 1]} : vector<8x32xf32> to vector<8x8xf32>
    %cst_24 = arith.constant dense<0.000000e+00> : vector<8x8xf32>
    %56 = tpu.matmul %54, %55, %cst_24 {dimension_numbers = #tpu.dot_dimension_numbers<[1], [0], [0], [1], [0, 0, 1, 1], [], []>} : vector<8x8xf32>, vector<8x8xf32>, vector<8x8xf32> -> vector<8x8xf32>
    %57 = vector.extract_strided_slice %32 {offsets = [0, 8], sizes = [8, 8], strides = [1, 1]} : vector<8x32xf32> to vector<8x8xf32>
    %58 = vector.extract_strided_slice %33 {offsets = [0, 8], sizes = [8, 8], strides = [1, 1]} : vector<8x32xf32> to vector<8x8xf32>
    %59 = tpu.transpose %58, [1, 0] : vector<8x8xf32> -> vector<8x8xf32>
    %cst_25 = arith.constant dense<0.000000e+00> : vector<8x8xf32>
    %60 = tpu.matmul %57, %59, %cst_25 {dimension_numbers = #tpu.dot_dimension_numbers<[1], [0], [0], [1], [0, 0, 1, 1], [], []>} : vector<8x8xf32>, vector<8x8xf32>, vector<8x8xf32> -> vector<8x8xf32>
    %cst_26 = arith.constant 0.353553385 : f32
    %61 = vector.broadcast %cst_26 : f32 to vector<8x8xf32>
    %62 = arith.mulf %60, %61 : vector<8x8xf32>
    %cst_27 = arith.constant 5.000000e-01 : f32
    %63 = vector.broadcast %cst_27 : f32 to vector<8x8xf32>
    %64 = arith.cmpf olt, %3, %63 : vector<8x8xf32>
    %cst_28 = arith.constant -1.000000e+09 : f32
    %65 = vector.broadcast %cst_28 : f32 to vector<8x8xf32>
    %66 = arith.select %64, %65, %62 : vector<8x8xi1>, vector<8x8xf32>
    %cst_29 = arith.constant dense<0xFF800000> : vector<8xf32>
    %67 = vector.multi_reduction <maximumf>, %66, %cst_29 [1] : vector<8x8xf32> to vector<8xf32>
    %68 = vector.shape_cast %67 : vector<8xf32> to vector<8x1xf32>
    %69 = vector.broadcast %68 : vector<8x1xf32> to vector<8x8xf32>
    %70 = arith.subf %66, %69 : vector<8x8xf32>
    %71 = math.exp %70 : vector<8x8xf32>
    %cst_30 = arith.constant dense<0.000000e+00> : vector<8xf32>
    %72 = vector.multi_reduction <add>, %71, %cst_30 [1] : vector<8x8xf32> to vector<8xf32>
    %73 = vector.shape_cast %72 : vector<8xf32> to vector<8x1xf32>
    %74 = tpu.reciprocal %73 {approx = true} : vector<8x1xf32> -> vector<8x1xf32>
    %75 = vector.broadcast %74 : vector<8x1xf32> to vector<8x8xf32>
    %76 = arith.mulf %71, %75 : vector<8x8xf32>
    %77 = vector.extract_strided_slice %34 {offsets = [0, 8], sizes = [8, 8], strides = [1, 1]} : vector<8x32xf32> to vector<8x8xf32>
    %cst_31 = arith.constant dense<0.000000e+00> : vector<8x8xf32>
    %78 = tpu.matmul %76, %77, %cst_31 {dimension_numbers = #tpu.dot_dimension_numbers<[1], [0], [0], [1], [0, 0, 1, 1], [], []>} : vector<8x8xf32>, vector<8x8xf32>, vector<8x8xf32> -> vector<8x8xf32>
    %79 = vector.extract_strided_slice %32 {offsets = [0, 16], sizes = [8, 8], strides = [1, 1]} : vector<8x32xf32> to vector<8x8xf32>
    %80 = vector.extract_strided_slice %33 {offsets = [0, 16], sizes = [8, 8], strides = [1, 1]} : vector<8x32xf32> to vector<8x8xf32>
    %81 = tpu.transpose %80, [1, 0] : vector<8x8xf32> -> vector<8x8xf32>
    %cst_32 = arith.constant dense<0.000000e+00> : vector<8x8xf32>
    %82 = tpu.matmul %79, %81, %cst_32 {dimension_numbers = #tpu.dot_dimension_numbers<[1], [0], [0], [1], [0, 0, 1, 1], [], []>} : vector<8x8xf32>, vector<8x8xf32>, vector<8x8xf32> -> vector<8x8xf32>
    %cst_33 = arith.constant 0.353553385 : f32
    %83 = vector.broadcast %cst_33 : f32 to vector<8x8xf32>
    %84 = arith.mulf %82, %83 : vector<8x8xf32>
    %cst_34 = arith.constant 5.000000e-01 : f32
    %85 = vector.broadcast %cst_34 : f32 to vector<8x8xf32>
    %86 = arith.cmpf olt, %3, %85 : vector<8x8xf32>
    %cst_35 = arith.constant -1.000000e+09 : f32
    %87 = vector.broadcast %cst_35 : f32 to vector<8x8xf32>
    %88 = arith.select %86, %87, %84 : vector<8x8xi1>, vector<8x8xf32>
    %cst_36 = arith.constant dense<0xFF800000> : vector<8xf32>
    %89 = vector.multi_reduction <maximumf>, %88, %cst_36 [1] : vector<8x8xf32> to vector<8xf32>
    %90 = vector.shape_cast %89 : vector<8xf32> to vector<8x1xf32>
    %91 = vector.broadcast %90 : vector<8x1xf32> to vector<8x8xf32>
    %92 = arith.subf %88, %91 : vector<8x8xf32>
    %93 = math.exp %92 : vector<8x8xf32>
    %cst_37 = arith.constant dense<0.000000e+00> : vector<8xf32>
    %94 = vector.multi_reduction <add>, %93, %cst_37 [1] : vector<8x8xf32> to vector<8xf32>
    %95 = vector.shape_cast %94 : vector<8xf32> to vector<8x1xf32>
    %96 = tpu.reciprocal %95 {approx = true} : vector<8x1xf32> -> vector<8x1xf32>
    %97 = vector.broadcast %96 : vector<8x1xf32> to vector<8x8xf32>
    %98 = arith.mulf %93, %97 : vector<8x8xf32>
    %99 = vector.extract_strided_slice %34 {offsets = [0, 16], sizes = [8, 8], strides = [1, 1]} : vector<8x32xf32> to vector<8x8xf32>
    %cst_38 = arith.constant dense<0.000000e+00> : vector<8x8xf32>
    %100 = tpu.matmul %98, %99, %cst_38 {dimension_numbers = #tpu.dot_dimension_numbers<[1], [0], [0], [1], [0, 0, 1, 1], [], []>} : vector<8x8xf32>, vector<8x8xf32>, vector<8x8xf32> -> vector<8x8xf32>
    %101 = vector.extract_strided_slice %32 {offsets = [0, 24], sizes = [8, 8], strides = [1, 1]} : vector<8x32xf32> to vector<8x8xf32>
    %102 = vector.extract_strided_slice %33 {offsets = [0, 24], sizes = [8, 8], strides = [1, 1]} : vector<8x32xf32> to vector<8x8xf32>
    %103 = tpu.transpose %102, [1, 0] : vector<8x8xf32> -> vector<8x8xf32>
    %cst_39 = arith.constant dense<0.000000e+00> : vector<8x8xf32>
    %104 = tpu.matmul %101, %103, %cst_39 {dimension_numbers = #tpu.dot_dimension_numbers<[1], [0], [0], [1], [0, 0, 1, 1], [], []>} : vector<8x8xf32>, vector<8x8xf32>, vector<8x8xf32> -> vector<8x8xf32>
    %cst_40 = arith.constant 0.353553385 : f32
    %105 = vector.broadcast %cst_40 : f32 to vector<8x8xf32>
    %106 = arith.mulf %104, %105 : vector<8x8xf32>
    %cst_41 = arith.constant 5.000000e-01 : f32
    %107 = vector.broadcast %cst_41 : f32 to vector<8x8xf32>
    %108 = arith.cmpf olt, %3, %107 : vector<8x8xf32>
    %cst_42 = arith.constant -1.000000e+09 : f32
    %109 = vector.broadcast %cst_42 : f32 to vector<8x8xf32>
    %110 = arith.select %108, %109, %106 : vector<8x8xi1>, vector<8x8xf32>
    %cst_43 = arith.constant dense<0xFF800000> : vector<8xf32>
    %111 = vector.multi_reduction <maximumf>, %110, %cst_43 [1] : vector<8x8xf32> to vector<8xf32>
    %112 = vector.shape_cast %111 : vector<8xf32> to vector<8x1xf32>
    %113 = vector.broadcast %112 : vector<8x1xf32> to vector<8x8xf32>
    %114 = arith.subf %110, %113 : vector<8x8xf32>
    %115 = math.exp %114 : vector<8x8xf32>
    %cst_44 = arith.constant dense<0.000000e+00> : vector<8xf32>
    %116 = vector.multi_reduction <add>, %115, %cst_44 [1] : vector<8x8xf32> to vector<8xf32>
    %117 = vector.shape_cast %116 : vector<8xf32> to vector<8x1xf32>
    %118 = tpu.reciprocal %117 {approx = true} : vector<8x1xf32> -> vector<8x1xf32>
    %119 = vector.broadcast %118 : vector<8x1xf32> to vector<8x8xf32>
    %120 = arith.mulf %115, %119 : vector<8x8xf32>
    %121 = vector.extract_strided_slice %34 {offsets = [0, 24], sizes = [8, 8], strides = [1, 1]} : vector<8x32xf32> to vector<8x8xf32>
    %cst_45 = arith.constant dense<0.000000e+00> : vector<8x8xf32>
    %122 = tpu.matmul %120, %121, %cst_45 {dimension_numbers = #tpu.dot_dimension_numbers<[1], [0], [0], [1], [0, 0, 1, 1], [], []>} : vector<8x8xf32>, vector<8x8xf32>, vector<8x8xf32> -> vector<8x8xf32>
    %123 = tpu.concatenate %56, %78, %100, %122 in 1 : vector<8x8xf32>, vector<8x8xf32>, vector<8x8xf32>, vector<8x8xf32> -> vector<8x32xf32>
    %c0_46 = arith.constant 0 : index
    %c0_47 = arith.constant 0 : index
    %124 = vector.load %arg7[%c0_46, %c0_47] : memref<32x32xf32, #tpu.memory_space<vmem>>, vector<32x32xf32>
    %cst_48 = arith.constant dense<0.000000e+00> : vector<8x32xf32>
    %125 = tpu.matmul %123, %124, %cst_48 {dimension_numbers = #tpu.dot_dimension_numbers<[1], [0], [0], [1], [0, 0, 1, 1], [], []>} : vector<8x32xf32>, vector<32x32xf32>, vector<8x32xf32> -> vector<8x32xf32>
    %126 = arith.addf %1, %125 : vector<8x32xf32>
    %c0_49 = arith.constant 0 : index
    %c0_50 = arith.constant 0 : index
    %127 = vector.load %arg8[%c0_49, %c0_50] : memref<1x32xf32, #tpu.memory_space<vmem>>, vector<1x32xf32>
    %128 = vector.broadcast %127 : vector<1x32xf32> to vector<8x32xf32>
    %129 = arith.addf %126, %128 : vector<8x32xf32>
    %c0_51 = arith.constant 0 : index
    %c0_52 = arith.constant 0 : index
    %130 = vector.load %arg9[%c0_51, %c0_52] : memref<1x32xf32, #tpu.memory_space<vmem>>, vector<1x32xf32>
    %c0_53 = arith.constant 0 : index
    %c0_54 = arith.constant 0 : index
    %131 = vector.load %arg10[%c0_53, %c0_54] : memref<1x32xf32, #tpu.memory_space<vmem>>, vector<1x32xf32>
    %cst_55 = arith.constant dense<0.000000e+00> : vector<8xf32>
    %132 = vector.multi_reduction <add>, %129, %cst_55 [1] : vector<8x32xf32> to vector<8xf32>
    %133 = vector.shape_cast %132 : vector<8xf32> to vector<8x1xf32>
    %cst_56 = arith.constant 3.200000e+01 : f32
    %134 = vector.broadcast %cst_56 : f32 to vector<8x1xf32>
    %135 = arith.divf %133, %134 : vector<8x1xf32>
    %136 = vector.broadcast %135 : vector<8x1xf32> to vector<8x32xf32>
    %137 = arith.subf %129, %136 : vector<8x32xf32>
    %138 = arith.mulf %137, %137 : vector<8x32xf32>
    %cst_57 = arith.constant dense<0.000000e+00> : vector<8xf32>
    %139 = vector.multi_reduction <add>, %138, %cst_57 [1] : vector<8x32xf32> to vector<8xf32>
    %140 = vector.shape_cast %139 : vector<8xf32> to vector<8x1xf32>
    %cst_58 = arith.constant 3.100000e+01 : f32
    %141 = vector.broadcast %cst_58 : f32 to vector<8x1xf32>
    %142 = arith.divf %140, %141 : vector<8x1xf32>
    %143 = math.sqrt %142 : vector<8x1xf32>
    %144 = vector.broadcast %130 : vector<1x32xf32> to vector<8x32xf32>
    %145 = arith.mulf %144, %137 : vector<8x32xf32>
    %cst_59 = arith.constant 9.99999997E-7 : f32
    %146 = vector.broadcast %cst_59 : f32 to vector<8x1xf32>
    %147 = arith.addf %143, %146 : vector<8x1xf32>
    %148 = tpu.reciprocal %147 {approx = true} : vector<8x1xf32> -> vector<8x1xf32>
    %149 = vector.broadcast %148 : vector<8x1xf32> to vector<8x32xf32>
    %150 = arith.mulf %145, %149 : vector<8x32xf32>
    %151 = vector.broadcast %131 : vector<1x32xf32> to vector<8x32xf32>
    %152 = arith.addf %150, %151 : vector<8x32xf32>
    %c0_60 = arith.constant 0 : index
    %c0_61 = arith.constant 0 : index
    %153 = vector.load %arg11[%c0_60, %c0_61] : memref<32x64xf32, #tpu.memory_space<vmem>>, vector<32x64xf32>
    %cst_62 = arith.constant dense<0.000000e+00> : vector<8x64xf32>
    %154 = tpu.matmul %152, %153, %cst_62 {dimension_numbers = #tpu.dot_dimension_numbers<[1], [0], [0], [1], [0, 0, 1, 1], [], []>} : vector<8x32xf32>, vector<32x64xf32>, vector<8x64xf32> -> vector<8x64xf32>
    %c0_63 = arith.constant 0 : index
    %c0_64 = arith.constant 0 : index
    %155 = vector.load %arg12[%c0_63, %c0_64] : memref<1x64xf32, #tpu.memory_space<vmem>>, vector<1x64xf32>
    %156 = vector.broadcast %155 : vector<1x64xf32> to vector<8x64xf32>
    %157 = arith.addf %154, %156 : vector<8x64xf32>
    %cst_65 = arith.constant 0.000000e+00 : f32
    %158 = vector.broadcast %cst_65 : f32 to vector<8x64xf32>
    %159 = arith.maximumf %157, %158 : vector<8x64xf32>
    %c0_66 = arith.constant 0 : index
    %c0_67 = arith.constant 0 : index
    %160 = vector.load %arg13[%c0_66, %c0_67] : memref<64x32xf32, #tpu.memory_space<vmem>>, vector<64x32xf32>
    %cst_68 = arith.constant dense<0.000000e+00> : vector<8x32xf32>
    %161 = tpu.matmul %159, %160, %cst_68 {dimension_numbers = #tpu.dot_dimension_numbers<[1], [0], [0], [1], [0, 0, 1, 1], [], []>} : vector<8x64xf32>, vector<64x32xf32>, vector<8x32xf32> -> vector<8x32xf32>
    %162 = arith.addf %129, %161 : vector<8x32xf32>
    %c0_69 = arith.constant 0 : index
    %c0_70 = arith.constant 0 : index
    %163 = vector.load %arg14[%c0_69, %c0_70] : memref<1x32xf32, #tpu.memory_space<vmem>>, vector<1x32xf32>
    %164 = vector.broadcast %163 : vector<1x32xf32> to vector<8x32xf32>
    %165 = arith.addf %162, %164 : vector<8x32xf32>
    %c0_71 = arith.constant 0 : index
    %c0_72 = arith.constant 0 : index
    %c0_73 = arith.constant 0 : index
    %166 = vector.load %arg15[%c0_71, %c0_72, %c0_73] : memref<1x8x32xf32, #tpu.memory_space<vmem>>, vector<1x8x32xf32>
    %167 = vector.shape_cast %166 : vector<1x8x32xf32> to vector<8x32xf32>
    %168 = vector.shape_cast %165 : vector<8x32xf32> to vector<1x8x32xf32>
    tpu.vector_store %arg15[%c0_71, %c0_72, %c0_73], %168 {strides = array<i32>} : memref<1x8x32xf32, #tpu.memory_space<vmem>>, vector<1x8x32xf32>,
    return
  }
  func.func @transform_0(%arg0: i32) -> (i32, i32, i32) {
    %c0_i32 = arith.constant 0 : i32
    %c0_i32_0 = arith.constant 0 : i32
    %c0_i32_1 = arith.constant 0 : i32
    return %arg0, %c0_i32, %c0_i32_0 : i32, i32, i32
  }
  func.func @transform_1(%arg0: i32) -> (i32, i32, i32) {
    %c0_i32 = arith.constant 0 : i32
    %c0_i32_0 = arith.constant 0 : i32
    %c0_i32_1 = arith.constant 0 : i32
    return %arg0, %c0_i32, %c0_i32_0 : i32, i32, i32
  }
  func.func @transform_2(%arg0: i32) -> (i32, i32) {
    %c0_i32 = arith.constant 0 : i32
    %c0_i32_0 = arith.constant 0 : i32
    %c0_i32_1 = arith.constant 0 : i32
    return %c0_i32, %c0_i32_0 : i32, i32
  }
  func.func @transform_3(%arg0: i32) -> (i32, i32) {
    %c0_i32 = arith.constant 0 : i32
    %c0_i32_0 = arith.constant 0 : i32
    %c0_i32_1 = arith.constant 0 : i32
    return %c0_i32, %c0_i32_0 : i32, i32
  }
  func.func @transform_4(%arg0: i32) -> (i32, i32) {
    %c0_i32 = arith.constant 0 : i32
    %c0_i32_0 = arith.constant 0 : i32
    %c0_i32_1 = arith.constant 0 : i32
    return %c0_i32, %c0_i32_0 : i32, i32
  }
  func.func @transform_5(%arg0: i32) -> (i32, i32) {
    %c0_i32 = arith.constant 0 : i32
    %c0_i32_0 = arith.constant 0 : i32
    %c0_i32_1 = arith.constant 0 : i32
    return %c0_i32, %c0_i32_0 : i32, i32
  }
  func.func @transform_6(%arg0: i32) -> (i32, i32) {
    %c0_i32 = arith.constant 0 : i32
    %c0_i32_0 = arith.constant 0 : i32
    %c0_i32_1 = arith.constant 0 : i32
    return %c0_i32, %c0_i32_0 : i32, i32
  }
  func.func @transform_7(%arg0: i32) -> (i32, i32) {
    %c0_i32 = arith.constant 0 : i32
    %c0_i32_0 = arith.constant 0 : i32
    %c0_i32_1 = arith.constant 0 : i32
    return %c0_i32, %c0_i32_0 : i32, i32
  }
  func.func @transform_8(%arg0: i32) -> (i32, i32) {
    %c0_i32 = arith.constant 0 : i32
    %c0_i32_0 = arith.constant 0 : i32
    %c0_i32_1 = arith.constant 0 : i32
    return %c0_i32, %c0_i32_0 : i32, i32
  }
  func.func @transform_9(%arg0: i32) -> (i32, i32) {
    %c0_i32 = arith.constant 0 : i32
    %c0_i32_0 = arith.constant 0 : i32
    %c0_i32_1 = arith.constant 0 : i32
    return %c0_i32, %c0_i32_0 : i32, i32
  }
  func.func @transform_10(%arg0: i32) -> (i32, i32) {
    %c0_i32 = arith.constant 0 : i32
    %c0_i32_0 = arith.constant 0 : i32
    %c0_i32_1 = arith.constant 0 : i32
    return %c0_i32, %c0_i32_0 : i32, i32
  }
  func.func @transform_11(%arg0: i32) -> (i32, i32) {
    %c0_i32 = arith.constant 0 : i32
    %c0_i32_0 = arith.constant 0 : i32
    %c0_i32_1 = arith.constant 0 : i32
    return %c0_i32, %c0_i32_0 : i32, i32
  }
  func.func @transform_12(%arg0: i32) -> (i32, i32) {
    %c0_i32 = arith.constant 0 : i32
    %c0_i32_0 = arith.constant 0 : i32
    %c0_i32_1 = arith.constant 0 : i32
    return %c0_i32, %c0_i32_0 : i32, i32
  }
  func.func @transform_13(%arg0: i32) -> (i32, i32) {
    %c0_i32 = arith.constant 0 : i32
    %c0_i32_0 = arith.constant 0 : i32
    %c0_i32_1 = arith.constant 0 : i32
    return %c0_i32, %c0_i32_0 : i32, i32
  }
  func.func @transform_14(%arg0: i32) -> (i32, i32, i32) {
    %c0_i32 = arith.constant 0 : i32
    %c0_i32_0 = arith.constant 0 : i32
    %c0_i32_1 = arith.constant 0 : i32
    return %arg0, %c0_i32, %c0_i32_0 : i32, i32, i32
  }
}

</mosaic_0001>

<bundles_post_ra>
// kernel: tpu_custom_call.1
= control target key start
LH: loop header
LB: loop body
LE: loop exit
PB: predicated region body
PF: predicated region fallthrough
CT: control target
= control target key end

     0   :  { %s1895_s0 = inlined_call_operand.hbm [shape: f32[2,8,32], index: 0, kind: input, shape index: {}]   ;;  %s1896_s1 = inlined_call_operand.hbm [shape: f32[2,8,8], index: 1, kind: input, shape index: {}]   ;;  %s1897_s2 = inlined_call_operand.vmem [shape: f32[1,32], index: 2, kind: input, shape index: {}]   ;;  %s1898_s3 = inlined_call_operand.hbm [shape: f32[1,32], index: 3, kind: input, shape index: {}]   ;;  %s1899_s4 = inlined_call_operand.vmem [shape: f32[32,96], index: 4, kind: input, shape index: {}]   ;;  %s1900_s5 = inlined_call_operand.vmem [shape: f32[1,96], index: 5, kind: input, shape index: {}]   ;;  %s1901_s6 = inlined_call_operand.vmem [shape: f32[32,32], index: 6, kind: input, shape index: {}]   ;;  %s1902_s7 = inlined_call_operand.vmem [shape: f32[1,32], index: 7, kind: input, shape index: {}]   ;;  %s1903_s8 = inlined_call_operand.vmem [shape: f32[1,32], index: 8, kind: input, shape index: {}]   ;;  %s1904_s9 = inlined_call_operand.vmem [shape: f32[1,32], index: 9, kind: input, shape index: {}]   ;;  %s1905_s10 = inlined_call_operand.vmem [shape: f32[32,64], index: 10, kind: input, shape index: {}]   ;;  %s1906_s11 = inlined_call_operand.vmem [shape: f32[1,64], index: 11, kind: input, shape index: {}]   ;;  %s1907_s12 = inlined_call_operand.vmem [shape: f32[64,32], index: 12, kind: input, shape index: {}]   ;;  %s1908_s13 = inlined_call_operand.vmem [shape: f32[1,32], index: 13, kind: input, shape index: {}]   ;;  %s1909_s14 = inlined_call_operand.hbm [shape: f32[2,8,32], index: 14, kind: output, shape index: {}]  }
   0x1   :  { %1919 = sst [smem:[#allocation20_spill]] %s1898_s3 }
   0x2   :  { %1920 = sst [smem:[#allocation21_spill]] %s1903_s8 }
   0x3   :  { %1921 = sst [smem:[#allocation22_spill]] %s1904_s9 }
   0x4   :  { %1922 = sst [smem:[#allocation23_spill]] %s1906_s11 }
   0x5   :  { %1923 = sst [smem:[#allocation24_spill]] %s1908_s13 }
   0x6   :  { %1924 = sst [smem:[#allocation25_spill]] %s1909_s14 }
   0x7   :  { %19 = vsyncpa [#allocation3], 0 }
   0x8   :  { %21 = vsyncpa [#allocation3 + $0x1], 0 }
   0x9   :  { %22 = vsyncpa [#allocation6], 0 }
   0xa   :  { %24 = vsyncpa [#allocation6 + $0x1], 0 }
   0xb   :  { %25 = vsyncpa [#allocation4], 0 }
   0xc   :  { %27 = vsyncpa [#allocation4 + $0x1], 0  ;;  %s1569_s29 = smov 0   ;;  %s1571_s30 = smov 0  }
   0xd   :  { %s1573_s15 = smov 0   ;;  %s1575_s16 = smov 0  }
   0xe LB: > { %1925 = sst [smem:[#allocation13_spill]] %s1463_s29  ;;  %s1590_s17 = sadd.s32 4294967295, %s1475_s16   ;;  %s1475_s16 = sphi %s1575_s16, %s1948_s16   ;;  %s1471_s15 = sphi %s1573_s15, %s1950_s15   ;;  %s1467_s30 = sphi %s1571_s30, %s1952_s30   ;;  %s1463_s29 = sphi %s1569_s29, %s1951_s29  }
   0xf   : > { %1926 = sst [smem:[#allocation14_spill]] %s1471_s15  ;;  %s1164_s18 = sadd.s32 4294967294, %s1475_s16  }
  0x10   : > { %1927 = sst [smem:[#allocation15_spill]] %s1475_s16  ;;  %p53_p0 = scmp.ne.s32.totalorder %s1467_s30, %s1463_s29 }
  0x11   : > { %p54_p1 = scmp.eq.s32.totalorder %s1590_s17, 0  ;;  %p355_p2 = scmp.eq.s32.totalorder %s1590_s17, 1 }
  0x12   : > { %p361_p3 = scmp.eq.s32.totalorder %s1164_s18, 1  ;;  %p1165_p5 = scmp.ge.s32.totalorder %s1475_s16, 1 }
  0x13   : > { %p1599_p4 = por %p54_p1, %p53_p0  ;;  %p368_p7 = scmp.lt.s32.totalorder %s1475_s16, 3 }
  0x14   : > { %p1604_p6 = por %p361_p3, %p53_p0  ;;  %s1931_s3 = sld [smem:[#allocation20_spill]] }
  0x15   : > { %p1612_p8 = pnand %p1165_p5, %p368_p7  ;;  %s1477_s25 = smov [#allocation7]  }
  0x16   : > { %s1929_s20 = scalar_select %p1604_p6, 1, 0 }
  0x17   : > { %p1207_p10 = pneg %p1612_p8  ;;  %s385_s26 = sshll.u32 %s1477_s25, 4  ;;  %s386_s26 = int_to_ptr.vmem [resolvable:$true] %s385_s26 }
  0x18   : > { %1930 = sst [smem:[#allocation16_spill]] %s1929_s20  ;;  %s1622_s27 = sadd.s32 1, %s1475_s16  }
  0x19   : > { %p1208_p11 = pnand %p1207_p10, %p54_p1  ;;  %1933 = sst [smem:[#allocation17_spill]] %s1622_s27 }
  0x1a   : > { %s383_s23 = sshll.u32 %s1931_s3, 4  ;;  %s40_s28 = sadd.s32 1, %s1471_s15  ;;  %s384_s23 = int_to_ptr.hbm [resolvable:$true] %s383_s23 }
  0x1b   : > { %s37_s18 = ssub.s32 %s1475_s16, %s1622_s27  ;;  %p47_p13 = scmp.ne.s32.totalorder %s1471_s15, %s1467_s30 }
  0x1c   : > { %1210 = dma.hbm_to_vmem [thread:$0]  (!%p1208_p11), %s384_s23, 16, %s386_s26, [#allocation6]  }
  0x1d   : > { %p38_p12 = scmp.eq.s32.totalorder %s37_s18, 0  ;;  %p48_p0 = scmp.eq.s32.totalorder %s1475_s16, 0 }
  0x1e   : > { %p1223_p3 = scmp.lt.s32.totalorder %s1475_s16, 2  ;;  %p1636_p7 = por %p355_p2, %p47_p13 }
  0x1f   : > { %s1632_s21 = scalar_select %p38_p12, %s1471_s15, %s40_s28  }
  0x20   : > { %p49_p5 = por %p48_p0, %p47_p13  ;;  %s426_s25 = sand.u32 1, %s1471_s15  }
  0x21   : > { %1934 = sst [smem:[#allocation18_spill]] %s1632_s21  ;;  %s1169_s3 = sshll.u32 %s1475_s16, 3 }
  0x22   : > { %s1935_s22 = scalar_select %p1636_p7, 1, 0 }
  0x23   : > { %s1168_s20 = sshll.u32 %s426_s25, 3  ;;  %s434_s23 = scalar_lea.hbm %s1895_s0, %s1169_s3 }
  0x24   : > { %1936 = sst [smem:[#allocation19_spill]] %s1935_s22  ;;  %s436_s26 = sshll.u32 %s434_s23, 4  ;;  %s437_s26 = int_to_ptr.hbm [resolvable:$true] %s436_s26 }
  0x25   : > { %s430_s18 = scalar_lea.vmem [#allocation2], %s1168_s20  ;;  %p1647_p10 = pnand %p1223_p3, %p49_p5 }
  0x26   : > { %s438_s13 = sshll.u32 %s430_s18, 4  ;;  %s453_s15 = scalar_lea.hbm %s1896_s1, %s1169_s3  ;;  %s439_s13 = int_to_ptr.vmem [resolvable:$true] %s438_s13 }
  0x27   : > { %s445_s22 = sand.u32 1, %s1475_s16   ;;  %s427_s11 = scalar_lea.sflag [#allocation3], %s426_s25 }
  0x28   : > { %s1341_s29 = sshra.s32 %s437_s26, 4  ;;  %p1345_p11 = pneg %p1647_p10  ;;  %s1342_s29 = int_to_ptr.hbm [resolvable:$true] %s1341_s29 }
  0x29   : > { %s1343_s27 = scalar_lea.hbm %s1342_s29, 8  ;;  %s1348_s9 = scalar_lea.hbm %s1895_s0, 16 }
  0x2a   : > { %p1344_p2 = scmp.ne.s32.totalorder %s1342_s29, %s1343_s27  ;;  %p1349_p0 = scmp.lt.s32.totalorder %s1342_s29, %s1895_s0 }
  0x2b   : > { %p1350_p3 = scmp.lt.s32.totalorder %s1348_s9, %s1343_s27 }
  0x2c   : > { %p1346_p12 = pnand %p1345_p11, %p1344_p2 }
  0x2d   : > { %p1351_p5 = por %p1350_p3, %p1349_p0 }
  0x2e   : > { %p1347_p13 = pneg %p1346_p12 }
  0x30   : > { %p1352_p9 = pnand %p1351_p5, %p1347_p13 }
  0x32   : > { %1355 = shalt.err (!%p1352_p9)
}
  0x33   : > { %1214 = dma.hbm_to_vmem [thread:$0]  (!%p1647_p10), %s437_s26, 128, %s439_s13, %s427_s11  }
  0x34   : > { %s455_s3 = sshll.u32 %s453_s15, 4  ;;  %s449_s25 = scalar_lea.vmem [#allocation5], %s1168_s20  ;;  %s456_s3 = int_to_ptr.hbm [resolvable:$true] %s455_s3 }
  0x35   : > { %s457_s16 = sshll.u32 %s449_s25, 4  ;;  %s446_s8 = scalar_lea.sflag [#allocation6], %s445_s22  ;;  %s458_s16 = int_to_ptr.vmem [resolvable:$true] %s457_s16 }
  0x36   : > { %s1371_s23 = sshra.s32 %s456_s3, 4  ;;  %s1378_s27 = scalar_lea.hbm %s1896_s1, 16  ;;  %s1372_s23 = int_to_ptr.hbm [resolvable:$true] %s1371_s23 }
  0x37   : > { %s1373_s18 = scalar_lea.hbm %s1372_s23, 8  ;;  %p1379_p9 = scmp.lt.s32.totalorder %s1372_s23, %s1896_s1 }
  0x38   : > { %p1374_p2 = scmp.ne.s32.totalorder %s1372_s23, %s1373_s18  ;;  %p1380_p13 = scmp.lt.s32.totalorder %s1378_s27, %s1373_s18 }
  0x3a   : > { %p1376_p12 = pnand %p1374_p2, %p1345_p11  ;;  %p1381_p3 = por %p1380_p13, %p1379_p9 }
  0x3c   : > { %p1377_p0 = pneg %p1376_p12 }
  0x3e   : > { %p1382_p5 = pnand %p1381_p3, %p1377_p0 }
  0x40   : > { %1385 = shalt.err (!%p1382_p5)
}
  0x41   : > { %1217 = dma.hbm_to_vmem [thread:$0]  (!%p1647_p10), %s456_s3, 128, %s458_s16, %s446_s8  }
  0x42   : > { %466 = sbr.rel (%p1612_p8) target bundleno = 2322 (0x912), region = 76  ;;  %s1682_s13 = sand.u32 (!%p1612_p8), 1, %s1467_s30  }
  0x43   : > { %s1685_s15 = sshll.u32 (!%p1612_p8), %s1682_s13, 3  ;;  %s469_s20 = scalar_lea.sflag (!%p1612_p8), [#allocation3], %s1682_s13 }
  0x44   : > { %s472_s22 = scalar_lea.vmem (!%p1612_p8), [#allocation2], %s1685_s15 }
  0x47   : > { %1446 = dma.done.wait (%p1599_p4), %s469_s20, 128  }
  0x48   : > { %1448 = vsyncadd (%p1599_p4), %s469_s20, 4294967168  ;;  %s478_s8 = sand.u32 1, %s1590_s17   ;;  %s482_s24 = scalar_lea.vmem [#allocation5], %s1685_s15 }
  0x49   : > { %s479_s16 = scalar_lea.sflag [#allocation6], %s478_s8 }
  0x4a   : > { %1450 = dma.done.wait (%p1599_p4), %s479_s16, 128  }
  0x4b   : > { %1452 = vsyncadd (%p1599_p4), %s479_s16, 4294967168 }
  0x4c   : > { %1454 = dma.done.wait (%p54_p1), [#allocation6], 16  }
  0x4d   : > { %1456 = vsyncadd (%p54_p1), [#allocation6], 4294967280  ;;  %vm542_vm0 = vcmask 261120   ;;  %v1703_v0 = vld [vmem:[%s472_s22] sm:$0xff]  ;;  %v1478_v2 = vmov 32.0   ;;  %v1479_v14 = vmov 31.0  }
  0x4e   : > { %v543_v1 = vsel %vm542_vm0, %v1703_v0, 0.0  ;;  %1283 = vrcp.f32 %v1478_v2  ;;  %v593_v15 = vld [vmem:[%s1899_s4 + $0x18] sm:$0xff]  ;;  %v592_v16 = vld [vmem:[%s1899_s4 + $0x10] sm:$0xff]  ;;  %v591_v18 = vld [vmem:[%s1899_s4 + $0x8] sm:$0xff]  ;;  %s1480_s11 = smov 64   ;;  %s1481_s20 = smov 120  }
  0x4f   : > { %544 = vadd.xlane.f32.xlu0 %v543_v1  ;;  %1285 = vrcp.f32 %v1479_v14  ;;  %613 = vmatpush.msra.mxu0 %v593_v15  ;;  %v590_v20 = vld [vmem:[%s1899_s4] sm:$0xff]  ;;  %s1482_s22 = smov 96   ;;  %s1483_s8 = smov 72   ;;  %vm624_vm5 = vcmask 64512   ;;  %v1748_v51 = vld [vmem:[%s482_s24] sm:$0xff]  ;;  %vm903_vm7 = vcmask 130048  }
  0x50   : > { %v1275_v38 = vld [vmem:[%s1897_s2] ss:$0 sm:$0xff]  ;;  %s1484_s16 = smov 88   ;;  %vm650_vm6 = vcmp.lt.f32.partialorder %v1748_v51, 0.5  ;;  %s1485_s24 = smov 56   ;;  %v909_v51 = vld [vmem:[%s1901_s6 + $0x10] sm:$0xff] }
  0x51   : > { %614 = vmatpush.msra.mxu0 %v592_v16  ;;  %v1276_v40 = vld [vmem:[#allocation7] ss:$0 sm:$0xff]  ;;  %s1486_s19 = smov 80   ;;  %s1487_s26 = smov 104   ;;  %vm905_vm8 = vcmask 195584   ;;  %vm1015_vm11 = vcmask 523264  }
  0x52   : > { %v1277_v44 = vld [vmem:[%s1900_s5] ss:$0 sm:$0xff]  ;;  %s1488_s28 = smov 112   ;;  %s1489_s21 = smov 48  }
  0x53   : > { %615 = vmatpush.msra.mxu0 %v591_v18  ;;  %s1490_s3 = smov 8   ;;  %s1491_s25 = smov 40  }
  0x54   : > { %v1284_v3 = vpop.eup %1283  ;;  %s1492_s23 = smov 16   ;;  %s1493_s18 = smov 24  }
  0x55   : > { %v547_v4 = vmul.f32 32.0, %v1284_v3  ;;  %vm551_vm1 = vweird.f32 %v1284_v3  ;;  %v1286_v17 = vpop.eup %1285  ;;  %616 = vmatpush.msra.mxu0 %v590_v20 }
  0x56   : > { %v560_v19 = vmul.f32 31.0, %v1286_v17  ;;  %vm564_vm2 = vweird.f32 %v1286_v17 }
  0x57   : > { %v548_v5 = vsub.f32 1.0, %v547_v4 }
  0x58   : > { %v561_v21 = vsub.f32 1.0, %v560_v19 }
  0x59   : > { %v549_v6 = vmul.f32 %v1284_v3, %v548_v5 }
  0x5a   : > { %v562_v22 = vmul.f32 %v1286_v17, %v561_v21 }
  0x5b   : > { %v550_v7 = vadd.f32 %v1284_v3, %v549_v6 }
  0x5c   : > { %v563_v23 = vadd.f32 %v1286_v17, %v562_v22 }
  0x5d   : > { %v1707_v8 = vsel %vm551_vm1, %v1284_v3, %v550_v7 }
  0x5e   : > { %v1724_v24 = vsel %vm564_vm2, %v1286_v17, %v563_v23 }
  0xc2   : > { %v545_v9 = vpop.xlane.xlu0 %544 }
  0xc3   : > { %v553_v10 = vmul.f32 %v1707_v8, %v545_v9 }
  0xc5   : > { %v554_v11 = vsub.f32 %v1703_v0, %v553_v10 }
  0xc7   : > { %v555_v12 = vmul.f32 %v554_v11, %v554_v11  ;;  %v582_v39 = vmul.f32 %v1275_v38, %v554_v11 }
  0xc9   : > { %v556_v13 = vsel %vm542_vm0, %v555_v12, 0.0 }
  0xca   : > { %557 = vadd.xlane.f32.xlu0 %v556_v13 }
 0x13d   : > { %v558_v25 = vpop.xlane.xlu0 %557 }
 0x13e   : > { %v566_v26 = vmul.f32 %v1724_v24, %v558_v25 }
 0x140   : > { %1287 = vrsqrt.f32 %v566_v26  ;;  %vm574_vm3 = vcmp.eq.f32.partialorder %v566_v26, inf  ;;  %v577_v34 = vand.u32 2147483648, %v566_v26  ;;  %vm576_vm4 = vcmp.eq.f32.partialorder %v566_v26, 0.0 }
 0x146   : > { %v1288_v27 = vpop.eup %1287 }
 0x147   : > { %v568_v28 = vmul.f32 %v1288_v27, %v566_v26 }
 0x149   : > { %v569_v29 = vmul.f32 %v1288_v27, %v568_v28 }
 0x14b   : > { %v570_v30 = vmul.f32 0.5, %v569_v29 }
 0x14d   : > { %v571_v31 = vsub.f32 1.5, %v570_v30 }
 0x14f   : > { %v572_v32 = vmul.f32 %v1288_v27, %v571_v31 }
 0x151   : > { %v573_v33 = vmul.f32 %v572_v32, %v566_v26 }
 0x153   : > { %v575_v35 = vsel %vm574_vm3, %v566_v26, %v573_v33 }
 0x154   : > { %v578_v36 = vsel %vm576_vm4, %v577_v34, %v575_v35 }
 0x155   : > { %v583_v37 = vadd.f32 1e-06, %v578_v36 }
 0x157   : > { %1289 = vrcp.f32 %v583_v37 }
 0x15d   : > { %v1290_v41 = vpop.eup %1289 }
 0x15e   : > { %v585_v42 = vmul.f32 %v1290_v41, %v582_v39 }
 0x160   : > { %v589_v43 = vadd.f32 %v1276_v40, %v585_v42 }
 0x162   : > { %1177 = vmatmul.msk.f32.vlgmr.msra.gmra.mxu0 %vm542_vm0, %v589_v43 }
 0x1df   : > { %v618_v45 = vpop.f32.mrf.mxu0 }
 0x1e0   : > { %v1734_v46 = vadd.f32 %v1277_v44, %v618_v45 }
 0x1e2   : > { %663 = vrot.lane.b32.xlu0 %v1734_v46, %s1480_s11  ;;  %689 = vrot.lane.b32.xlu2 %v1734_v46, %s1481_s20 }
 0x1e3   : > { %622 = vrot.lane.b32.xlu1 %v1734_v46, %s1482_s22  ;;  %s1940_s22 = sld [smem:[#allocation23_spill]] }
 0x1ea   : > { %825 = vrot.lane.b32.xlu0 %v1734_v46, %s1483_s8  ;;  %s1194_s8 = sshll.u32 %s1590_s17, 3  ;;  %s1047_s17 = scalar_lea.sflag [#allocation4], %s1682_s13 }
 0x1eb   : > { %691 = vrot.lane.b32.xlu1 %v1734_v46, %s1484_s16 }
 0x23c   : > { %v690_v50 = vpop.permute.xlu2 %689 }
 0x254   : > { %v664_v47 = vpop.permute.xlu0 %663 }
 0x255   : > { %v623_v48 = vpop.permute.xlu1 %622  ;;  %684 = vmatpush.msra.mxu2 %v664_v47 }
 0x256   : > { %1178 = vmatpush.xpose.msk.msra.mxu1 %vm624_vm5, %v623_v48 }
 0x259   : > { %1179 = vmatmul.msk.f32.vlgmr.msra.gmra.mxu1 %vm624_vm5, %v1734_v46 }
 0x25c   : > { %v826_v63 = vpop.permute.xlu0 %825 }
 0x25d   : > { %v692_v49 = vpop.permute.xlu1 %691 }
 0x25e   : > { %1181 = vmatpush.xpose.msk.msra.mxu3 %vm624_vm5, %v692_v49 }
 0x261   : > { %1182 = vmatmul.msk.f32.vlgmr.msra.gmra.mxu3 %vm624_vm5, %v690_v50 }
 0x2d6   : > { %v646_v52 = vpop.f32.mrf.mxu1 }
 0x2d7   : > { %v649_v53 = vmul.f32 0.35355338, %v646_v52  ;;  %v908_v52 = vld [vmem:[%s1901_s6 + $0x8] sm:$0xff] }
 0x2d9   : > { %v651_v54 = vsel %vm650_vm6, -1e+09, %v649_v53  ;;  %v907_v53 = vld [vmem:[%s1901_s6] sm:$0xff] }
 0x2da   : > { %v652_v55 = vsel %vm624_vm5, %v651_v54, -inf }
 0x2db   : > { %653 = vmax.xlane.f32.xlu2 %v652_v55 }
 0x2e4   : > { %v714_v56 = vpop.f32.mrf.mxu3 }
 0x2e5   : > { %v717_v57 = vmul.f32 0.35355338, %v714_v56 }
 0x2e7   : > { %v718_v58 = vsel %vm650_vm6, -1e+09, %v717_v57 }
 0x2e8   : > { %v719_v59 = vsel %vm624_vm5, %v718_v58, -inf }
 0x2e9   : > { %720 = vmax.xlane.f32.xlu0 %v719_v59 }
 0x2f3   : > { %730 = vrot.lane.b32.xlu2 %v1734_v46, %s1485_s24 }
 0x2fd   : > { %758 = vrot.lane.b32.xlu0 %v1734_v46, %s1486_s19  ;;  %s1941_s19 = sld [smem:[#allocation25_spill]] }
 0x34e   : > { %v654_v60 = vpop.xlane.xlu2 %653 }
 0x34f   : > { %v655_v61 = vsub.f32 %v651_v54, %v654_v60  ;;  %v1278_v60 = vld [vmem:[%s1902_s7] ss:$0 sm:$0xff] }
 0x351   : > { %v656_v62 = vmul.f32 1.442695, %v655_v61 }
 0x353   : > { %1291 = vpow2.f32 %v656_v62 }
 0x356   : > { %v731_v1 = vpop.permute.xlu2 %730 }
 0x357   : > { %751 = vmatpush.msrb.mxu2 %v731_v1 }
 0x359   : > { %v1292_v2 = vpop.eup %1291 }
 0x35a   : > { %v658_v3 = vsel %vm624_vm5, %v1292_v2, 0.0 }
 0x35b   : > { %659 = vadd.xlane.f32.xlu1 %v658_v3 }
 0x35c   : > { %v721_v4 = vpop.xlane.xlu0 %720 }
 0x35d   : > { %v722_v5 = vsub.f32 %v718_v58, %v721_v4 }
 0x35f   : > { %v723_v6 = vmul.f32 1.442695, %v722_v5 }
 0x361   : > { %1293 = vpow2.f32 %v723_v6 }
 0x367   : > { %v1294_v7 = vpop.eup %1293 }
 0x368   : > { %v725_v9 = vsel %vm624_vm5, %v1294_v7, 0.0 }
 0x369   : > { %726 = vadd.xlane.f32.xlu0 %v725_v9  ;;  %v976_v9 = vld [vmem:[%s1905_s10 + $0x8] sm:$0xff] }
 0x36f   : > { %v759_v10 = vpop.permute.xlu0 %758 }
 0x370   : > { %1184 = vmatpush.xpose.msk.msrb.mxu1 %vm624_vm5, %v759_v10 }
 0x374   : > { %823 = vrot.lane.b32.xlu1 %v1734_v46, %s1487_s26  ;;  %s1057_s26 = scalar_lea.hbm %s1941_s19, %s1194_s8 }
 0x375   : > { %s1061_s9 = sshll.u32 %s1057_s26, 4  ;;  %s1062_s9 = int_to_ptr.hbm [resolvable:$true] %s1061_s9 }
 0x376   : > { %s1415_s29 = sshra.s32 %s1062_s9, 4  ;;  %s1416_s29 = int_to_ptr.hbm [resolvable:$true] %s1415_s29 }
 0x377   : > { %s1417_s27 = scalar_lea.hbm %s1416_s29, 8  ;;  %p1422_p10 = scmp.lt.s32.totalorder %s1416_s29, %s1941_s19 }
 0x378   : > { %p1418_p1 = scmp.ne.s32.totalorder %s1416_s29, %s1417_s27 }
 0x37a   : > { %p1419_p4 = pnand %p1418_p1, %p1636_p7 }
 0x37c   : > { %p1420_p8 = pneg %p1419_p4 }
 0x37d   : > { %756 = vrot.lane.b32.xlu0 %v1734_v46, %s1488_s28  ;;  %s1938_s28 = sld [smem:[#allocation21_spill]] }
 0x3ce   : > { %v660_v11 = vpop.xlane.xlu1 %659 }
 0x3cf   : > { %1295 = vrcp.f32 %v660_v11 }
 0x3d5   : > { %v1296_v12 = vpop.eup %1295 }
 0x3d6   : > { %v662_v13 = vmul.f32 %v1296_v12, %v1292_v2  ;;  %v1014_v12 = vld [vmem:[%s1907_s12 + $0x38] sm:$0xff] }
 0x3d7   : > { %1027 = vmatpush.msrb.mxu0 %v1014_v12 }
 0x3d8   : > { %1180 = vmatmul.msk.f32.vlgmr.msra.gmra.mxu2 %vm624_vm5, %v662_v13  ;;  %v1013_v13 = vld [vmem:[%s1907_s12 + $0x30] sm:$0xff] }
 0x3d9   : > { %1187 = vmatpush.xpose.msk.msra.mxu2 %vm624_vm5, %v826_v63  ;;  %1028 = vmatpush.msrb.mxu0 %v1013_v13 }
 0x3dc   : > { %v727_v14 = vpop.xlane.xlu0 %726 }
 0x3dd   : > { %1297 = vrcp.f32 %v727_v14  ;;  %v1012_v14 = vld [vmem:[%s1907_s12 + $0x28] sm:$0xff] }
 0x3de   : > { %1029 = vmatpush.msrb.mxu0 %v1012_v14 }
 0x3e3   : > { %v1298_v15 = vpop.eup %1297 }
 0x3e4   : > { %v729_v16 = vmul.f32 %v1298_v15, %v1294_v7  ;;  %v978_v7 = vld [vmem:[%s1905_s10 + $0x18] sm:$0xff] }
 0x3e6   : > { %1183 = vmatmul.msk.f32.vlgmr.msrb.gmra.mxu2 %vm624_vm5, %v729_v16  ;;  %v824_v17 = vpop.permute.xlu1 %823 }
 0x3ee   : > { %1188 = vmatmul.msk.f32.vlgmr.msra.gmra.mxu2 %vm624_vm5, %v824_v17  ;;  %v1010_v17 = vld [vmem:[%s1907_s12 + $0x18] sm:$0xff] }
 0x3ef   : > { %v757_v18 = vpop.permute.xlu0 %756 }
 0x3f0   : > { %1185 = vmatmul.msk.f32.vlgmr.msrb.gmra.mxu1 %vm624_vm5, %v757_v18 }
 0x45b   : > { %v1769_v19 = vpop.f32.mrf.mxu2 }
 0x469   : > { %v753_v20 = vpop.f32.mrf.mxu2 }
 0x46d   : > { %v781_v21 = vpop.f32.mrf.mxu1 }
 0x46e   : > { %v784_v22 = vmul.f32 0.35355338, %v781_v21 }
 0x470   : > { %v785_v23 = vsel %vm650_vm6, -1e+09, %v784_v22 }
 0x471   : > { %v848_v25 = vpop.f32.mrf.mxu2  ;;  %v786_v26 = vsel %vm624_vm5, %v785_v23, -inf }
 0x472   : > { %v851_v27 = vmul.f32 0.35355338, %v848_v25  ;;  %787 = vmax.xlane.f32.xlu2 %v786_v26 }
 0x474   : > { %v852_v28 = vsel %vm650_vm6, -1e+09, %v851_v27 }
 0x475   : > { %v853_v29 = vsel %vm624_vm5, %v852_v28, -inf }
 0x476   : > { %854 = vmax.xlane.f32.xlu0 %v853_v29 }
 0x48a   : > { %797 = vrot.lane.b32.xlu0 %v1734_v46, %s1489_s21 }
 0x4e5   : > { %v788_v30 = vpop.xlane.xlu2 %787 }
 0x4e6   : > { %v789_v31 = vsub.f32 %v785_v23, %v788_v30 }
 0x4e8   : > { %v790_v32 = vmul.f32 1.442695, %v789_v31 }
 0x4e9   : > { %v855_v33 = vpop.xlane.xlu0 %854 }
 0x4ea   : > { %1299 = vpow2.f32 %v790_v32  ;;  %v856_v34 = vsub.f32 %v852_v28, %v855_v33  ;;  %v1279_v28 = vld [vmem:[%s1938_s28] ss:$0 sm:$0xff] }
 0x4ec   : > { %v857_v35 = vmul.f32 1.442695, %v856_v34  ;;  %v1009_v34 = vld [vmem:[%s1907_s12 + $0x10] sm:$0xff] }
 0x4ee   : > { %1301 = vpow2.f32 %v857_v35  ;;  %v1008_v35 = vld [vmem:[%s1907_s12 + $0x8] sm:$0xff] }
 0x4f0   : > { %v1300_v36 = vpop.eup %1299 }
 0x4f1   : > { %v792_v37 = vsel %vm624_vm5, %v1300_v36, 0.0 }
 0x4f2   : > { %793 = vadd.xlane.f32.xlu1 %v792_v37  ;;  %v1281_v37 = vld [vmem:[%s1940_s22] ss:$0 sm:$0xff] }
 0x4f4   : > { %v1302_v38 = vpop.eup %1301 }
 0x4f5   : > { %v859_v39 = vsel %vm624_vm5, %v1302_v38, 0.0 }
 0x4f6   : > { %860 = vadd.xlane.f32.xlu2 %v859_v39 }
 0x4fc   : > { %v798_v40 = vpop.permute.xlu0 %797 }
 0x4fd   : > { %818 = vmatpush.msrb.mxu3 %v798_v40 }
 0x4ff   : > { %998 = vmatpush.msra.mxu3 %v978_v7 }
 0x50b   : > { %891 = vrot.lane.b32.xlu1 %v753_v20, %s1490_s3  ;;  %s1942_s3 = sld [smem:[#allocation24_spill]] }
 0x50e   : > { %864 = vrot.lane.b32.xlu2 %v1734_v46, %s1491_s25  ;;  %v910_v46 = vld [vmem:[%s1901_s6 + $0x18] sm:$0xff]  ;;  %s1939_s25 = sld [smem:[#allocation22_spill]] }
 0x50f   : > { %926 = vmatpush.msra.mxu1 %v910_v46 }
 0x511   : > { %927 = vmatpush.msra.mxu1 %v909_v51 }
 0x513   : > { %928 = vmatpush.msra.mxu1 %v908_v52 }
 0x514   : > { %v1280_v30 = vld [vmem:[%s1939_s25] ss:$0 sm:$0xff] }
 0x515   : > { %929 = vmatpush.msra.mxu1 %v907_v53 }
 0x565   : > { %v794_v41 = vpop.xlane.xlu1 %793 }
 0x566   : > { %1303 = vrcp.f32 %v794_v41  ;;  %v1282_v41 = vld [vmem:[%s1942_s3] ss:$0 sm:$0xff] }
 0x569   : > { %v861_v42 = vpop.xlane.xlu2 %860 }
 0x56a   : > { %1305 = vrcp.f32 %v861_v42 }
 0x56c   : > { %v1304_v43 = vpop.eup %1303 }
 0x56d   : > { %v796_v44 = vmul.f32 %v1304_v43, %v1300_v36  ;;  %v1007_v36 = vld [vmem:[%s1907_s12] sm:$0xff] }
 0x56f   : > { %1186 = vmatmul.msk.f32.vlgmr.msrb.gmra.mxu3 %vm624_vm5, %v796_v44 }
 0x570   : > { %v1306_v45 = vpop.eup %1305 }
 0x571   : > { %v863_v47 = vmul.f32 %v1306_v45, %v1302_v38  ;;  %v865_v48 = vpop.permute.xlu2 %864 }
 0x572   : > { %885 = vmatpush.msrb.mxu2 %v865_v48 }
 0x573   : > { %1189 = vmatmul.msk.f32.vlgmr.msrb.gmra.mxu2 %vm624_vm5, %v863_v47 }
 0x57d   : > { %v892_v55 = vpop.permute.xlu1 %891 }
 0x57e   : > { %v902_v56 = vsel %vm624_vm5, %v1769_v19, %v892_v55 }
 0x5f2   : > { %v820_v49 = vpop.f32.mrf.mxu3 }
 0x5f3   : > { %895 = vrot.lane.b32.xlu0 %v820_v49, %s1492_s23  ;;  %s537_s23 = scalar_lea.vmem [#allocation8], %s1685_s15  ;;  %s1421_s15 = scalar_lea.hbm %s1941_s19, 16 }
 0x5f4   : > { %p1423_p11 = scmp.lt.s32.totalorder %s1421_s15, %s1417_s27 }
 0x5f6   : > { %v887_v50 = vpop.f32.mrf.mxu2  ;;  %p1424_p2 = por %p1423_p11, %p1422_p10 }
 0x5f8   : > { %p1425_p12 = pnand %p1424_p2, %p1420_p8 }
 0x5fb   : > { %899 = vrot.lane.b32.xlu0 %v887_v50, %s1493_s18  ;;  %s1059_s18 = sshll.u32 %s537_s23, 4  ;;  %s1060_s18 = int_to_ptr.vmem [resolvable:$true] %s1059_s18 }
 0x665   : > { %v896_v54 = vpop.permute.xlu0 %895 }
 0x666   : > { %v904_v57 = vsel %vm903_vm7, %v902_v56, %v896_v54 }
 0x66d   : > { %v900_v58 = vpop.permute.xlu0 %899 }
 0x66e   : > { %v906_v59 = vsel %vm905_vm8, %v904_v57, %v900_v58 }
 0x66f   : > { %1190 = vmatmul.msk.f32.vlgmr.msra.gmra.mxu1 %vm542_vm0, %v906_v59 }
 0x6ec   : > { %v931_v61 = vpop.f32.mrf.mxu1 }
 0x6ed   : > { %v934_v62 = vadd.f32 %v931_v61, %v1703_v0  ;;  %v977_v0 = vld [vmem:[%s1905_s10 + $0x10] sm:$0xff] }
 0x6ee   : > { %999 = vmatpush.msra.mxu3 %v977_v0 }
 0x6ef   : > { %v1802_v63 = vadd.f32 %v1278_v60, %v934_v62 }
 0x6f0   : > { %1000 = vmatpush.msra.mxu3 %v976_v9 }
 0x6f1   : > { %v942_v1 = vsel %vm542_vm0, %v1802_v63, 0.0 }
 0x6f2   : > { %943 = vadd.xlane.f32.xlu2 %v942_v1 }
 0x765   : > { %v944_v2 = vpop.xlane.xlu2 %943 }
 0x766   : > { %v945_v3 = vmul.f32 %v944_v2, %v1707_v8  ;;  %v975_v8 = vld [vmem:[%s1905_s10] sm:$0xff] }
 0x767   : > { %1001 = vmatpush.msra.mxu3 %v975_v8 }
 0x768   : > { %v946_v4 = vsub.f32 %v1802_v63, %v945_v3 }
 0x76a   : > { %v947_v5 = vmul.f32 %v946_v4, %v946_v4  ;;  %v967_v29 = vmul.f32 %v1279_v28, %v946_v4 }
 0x76c   : > { %v948_v6 = vsel %vm542_vm0, %v947_v5, 0.0 }
 0x76d   : > { %949 = vadd.xlane.f32.xlu1 %v948_v6 }
 0x7e0   : > { %v950_v10 = vpop.xlane.xlu1 %949 }
 0x7e1   : > { %v951_v11 = vmul.f32 %v950_v10, %v1724_v24  ;;  %v1011_v24 = vld [vmem:[%s1907_s12 + $0x20] sm:$0xff] }
 0x7e2   : > { %1030 = vmatpush.msrb.mxu0 %v1011_v24 }
 0x7e3   : > { %1307 = vrsqrt.f32 %v951_v11  ;;  %vm959_vm9 = vcmp.eq.f32.partialorder %v951_v11, inf  ;;  %v962_v23 = vand.u32 2147483648, %v951_v11  ;;  %vm961_vm10 = vcmp.eq.f32.partialorder %v951_v11, 0.0 }
 0x7e4   : > { %1031 = vmatpush.msrb.mxu0 %v1010_v17 }
 0x7e6   : > { %1032 = vmatpush.msrb.mxu0 %v1009_v34 }
 0x7e8   : > { %1033 = vmatpush.msrb.mxu0 %v1008_v35 }
 0x7e9   : > { %v1308_v15 = vpop.eup %1307 }
 0x7ea   : > { %v953_v16 = vmul.f32 %v1308_v15, %v951_v11  ;;  %1034 = vmatpush.msrb.mxu0 %v1007_v36 }
 0x7ec   : > { %v954_v18 = vmul.f32 %v1308_v15, %v953_v16 }
 0x7ee   : > { %v955_v19 = vmul.f32 0.5, %v954_v18 }
 0x7f0   : > { %v956_v20 = vsub.f32 1.5, %v955_v19 }
 0x7f2   : > { %v957_v21 = vmul.f32 %v1308_v15, %v956_v20 }
 0x7f4   : > { %v958_v22 = vmul.f32 %v957_v21, %v951_v11 }
 0x7f6   : > { %v960_v25 = vsel %vm959_vm9, %v951_v11, %v958_v22 }
 0x7f7   : > { %v963_v26 = vsel %vm961_vm10, %v962_v23, %v960_v25 }
 0x7f8   : > { %v968_v27 = vadd.f32 1e-06, %v963_v26 }
 0x7fa   : > { %1309 = vrcp.f32 %v968_v27 }
 0x800   : > { %v1310_v31 = vpop.eup %1309 }
 0x801   : > { %v970_v32 = vmul.f32 %v1310_v31, %v967_v29 }
 0x803   : > { %v974_v33 = vadd.f32 %v1280_v30, %v970_v32 }
 0x805   : > { %1191 = vmatmul.msk.f32.vlgmr.msra.gmra.mxu3 %vm542_vm0, %v974_v33 }
 0x888   : > { %v1003_v38 = vpop.f32.mrf.mxu3 }
 0x889   : > { %v1004_v39 = vadd.f32 %v1281_v37, %v1003_v38 }
 0x88b   : > { %v1006_v40 = vmax.f32 %v1004_v39, 0.0 }
 0x88d   : > { %1192 = vmatmul.msk.f32.vlgmr.msrb.gmra.mxu0 %vm1015_vm11, %v1006_v40 }
 0x90a   : > { %v1036_v42 = vpop.f32.mrf.mxu0 }
 0x90b   : > { %v1039_v43 = vadd.f32 %v1036_v42, %v1802_v63 }
 0x90d   : > { %v1044_v44 = vadd.f32 %v1282_v41, %v1039_v43 }
 0x90f   : > { %1045 = vst.msk [vmem:[%s537_s23] sm:$0xff] %vm542_vm0, %v1044_v44 }
 0x910   : > { %1428 = shalt.err (!%p1425_p12)
}
 0x911   : > { %1205 = dma.vmem_to_hbm [thread:$0]  (%p1636_p7), %s1060_s18, 128, %s1062_s9, %s1047_s17  }
 0x912 PF: > { %s1944_s13 = sld [smem:[#allocation13_spill]] }
 0x913   : > { %s1946_s16 = sld [smem:[#allocation15_spill]] }
 0x918   : > { %s1073_s24 = sand.u32 1, %s1944_s13  }
 0x919   : > { %p1947_p0 = scmp.ge.s32.totalorder %s1946_s16, 2  ;;  %s1074_s26 = scalar_lea.sflag [#allocation4], %s1073_s24 }
 0x91b   : > { %p1219_p9 = pnand %p1947_p0, %p1604_p6 }
 0x91d   : > { %p1220_p13 = pneg %p1219_p9 }
 0x91f   : > { %1458 = dma.done.wait (%p1220_p13), %s1074_s26, 128  }
 0x920   : > { %1460 = vsyncadd (%p1220_p13), %s1074_s26, 4294967168  ;;  %s1948_s16 = sld [smem:[#allocation17_spill]]  ;;  %s1951_s29 = smov %s1467_s30 }
 0x921   : > { %s1949_s28 = sld [smem:[#allocation14_spill]] }
 0x922   : > { %s1950_s15 = sld [smem:[#allocation18_spill]] }
 0x926   : > { %p30_p3 = scmp.ge.s32.totalorder %s1948_s16, 4  }
 0x927   : > { %s1952_s30 = smov %s1949_s28 }
 0x928   :  { %32 = sbr.rel (!%p30_p3) target bundleno = 14 (0xe), region = 138 }
 0x92d   :  { %1080 = vsyncpa [#allocation3], 1 }
 0x92e   :  { %1082 = vsyncpa [#allocation3 + $0x1], 1 }
 0x92f   :  { %1083 = vsyncpa [#allocation6], 1 }
 0x930   :  { %1085 = vsyncpa [#allocation6 + $0x1], 1 }
 0x931   :  { %1086 = vsyncpa [#allocation4], 1 }
 0x932   :  { %1088 = vsyncpa [#allocation4 + $0x1], 1 }

</bundles_post_ra>
